<compile_context>
chip_gen: v6e
topology: v6e:2x2x1
jax: 0.10.0
libtpu: 0.0.40
codegen_flags: <defaults>
</compile_context>

<pallas_src>
import functools

import jax
import jax.numpy as jnp
import numpy as np
from jax.experimental import pallas as pl
from jax.experimental.pallas import tpu as pltpu

HIDDEN = 256


def _round_up(v, m):
    return ((v + m - 1) // m) * m


def _cdiv(a, b):
    return -(-a // b)


def softq_kernel(xa_ref, w1_ref, b1_ref, w2_ref, b2_ref, w3r_ref, b3_ref, out_ref):
    # fc1: bf16 MXU operands (xa pre-cast in the wrapper), f32 accumulation.
    h1 = jnp.dot(xa_ref[...], w1_ref[...],
                 preferred_element_type=jnp.float32) + b1_ref[...]
    h1 = jnp.maximum(h1, 0.0)

    # fc2 + relu.
    h2 = jnp.dot(h1.astype(jnp.bfloat16), w2_ref[...],
                 preferred_element_type=jnp.float32) + b2_ref[...]
    h2 = jnp.maximum(h2, 0.0)

    # fc3 (N=1) off the MXU: VPU multiply + XLU lane-reduce, scalar bias from SMEM.
    q = jnp.sum(h2 * w3r_ref[...], axis=-1) + b3_ref[0, 0]

    # Lane-dense store: (1, 1, tb) tile with the batch dim on lanes.
    out_ref[...] = q.reshape(out_ref.shape).astype(out_ref.dtype)


@functools.partial(jax.jit, static_argnames=("tb",))
def softq_forward(x, a, kparams, tb=1024):
    """x: (B, obs_dim) f32, a: (B, act_dim) f32, kparams from prepare_params -> (B, 1) f32."""
    w1b, b1, w2b, b2, w3r, b3 = kparams
    B = x.shape[0]

    # Single fused concat + bf16 cast in the wrapper (one tiny XLA op).  The merged [x|a]
    # keeps fc1 a single MXU pass; an in-kernel concat would need an unaligned-lane store
    # at offset obs_dim or a split-K fc1 (extra MXU pass), both worse on the MXU-bound path.
    # TODO(synk): fold the concat into the kernel if/when unaligned lane-offset VMEM stores
    # are supported, to drop this launch for the B~4 actor-step loop.
    xa = jnp.concatenate([x, a], axis=1).astype(jnp.bfloat16)
    in_dim = xa.shape[1]
    hidden = w2b.shape[0]

    # Batch tiling: one tiny 8-aligned tile for the actor-step regime; otherwise at least
    # two grid steps (keeps v7x's 2nd TensorCore busy), capped at `tb` rows per tile.
    if B <= 16:
        tb_eff = _round_up(max(B, 1), 8)
    else:
        tb_eff = min(_round_up(tb, 8), _round_up(_cdiv(B, 2), 8))
    num_tiles = _cdiv(B, tb_eff)

    def resident(arr):
        nd = arr.ndim
        return pl.BlockSpec(arr.shape, lambda i, _nd=nd: (0,) * _nd)

    # VMEM budget: double-buffered resident weights + activation/output tiles, plus the
    # f32 h1/h2 temporaries and some headroom.
    weight_bytes = sum(int(p.size) * jnp.dtype(p.dtype).itemsize
                       for p in (w1b, b1, w2b, b2, w3r))
    vmem_limit = int(min(
        max(2 * (weight_bytes + tb_eff * in_dim * 2 + tb_eff * 4)
            + 2 * tb_eff * hidden * 4 + (2 << 20), 8 << 20),
        64 << 20))

    total_rows = num_tiles * tb_eff
    flops = 2 * total_rows * (in_dim * hidden + hidden * hidden + hidden)
    bytes_accessed = int(xa.size) * 2 + total_rows * 4 + weight_bytes + 4

    out = pl.pallas_call(
        softq_kernel,
        out_shape=jax.ShapeDtypeStruct((num_tiles, 1, tb_eff), jnp.float32),
        grid=(num_tiles,),
        in_specs=[
            pl.BlockSpec((tb_eff, in_dim), lambda i: (i, 0)),    # activations: batch-tiled
            resident(w1b), resident(b1),                         # weights: VMEM-resident
            resident(w2b), resident(b2),
            resident(w3r),
            pl.BlockSpec(memory_space=pltpu.MemorySpace.SMEM),   # b3 scalar in SMEM
        ],
        out_specs=pl.BlockSpec((1, 1, tb_eff), lambda i: (i, 0, 0)),  # lane-dense Q tile
        compiler_params=pltpu.CompilerParams(
            dimension_semantics=("parallel",),
            vmem_limit_bytes=vmem_limit),
        cost_estimate=pl.CostEstimate(flops=flops, transcendentals=0,
                                      bytes_accessed=bytes_accessed),
    )(xa, w1b, b1, w2b, b2, w3r, b3)

    # (num_tiles, 1, tb_eff) -> (B, 1); rows past B are boundary-block garbage, dropped here.
    return out.reshape(-1)[:B][:, None]


def init_params(key, obs_dim, act_dim, hidden=HIDDEN):
    """Deterministic init mimicking torch.nn.Linear default U(-1/sqrt(fan_in), ...)."""
    in_dim = obs_dim + act_dim
    k = jax.random.split(key, 6)

    def uniform(kk, shape, fan_in):
        bound = 1.0 / np.sqrt(fan_in)
        return jax.random.uniform(kk, shape, jnp.float32, -bound, bound)

    w1 = uniform(k[0], (in_dim, hidden), in_dim)   # stored as (in, out)
    b1 = uniform(k[1], (1, hidden), in_dim)
    w2 = uniform(k[2], (hidden, hidden), hidden)
    b2 = uniform(k[3], (1, hidden), hidden)
    w3 = uniform(k[4], (hidden, 1), hidden)
    b3 = uniform(k[5], (1, 1), hidden)
    return (w1, b1, w2, b2, w3, b3)


def prepare_params(params):
    """One-time conversion to kernel layout (bf16 weights, w3 as a f32 row, scalar b3)."""
    w1, b1, w2, b2, w3, b3 = params
    return (w1.astype(jnp.bfloat16),
            b1.reshape(1, -1).astype(jnp.float32),
            w2.astype(jnp.bfloat16),
            b2.reshape(1, -1).astype(jnp.float32),
            w3.reshape(-1)[None, :].astype(jnp.float32),   # (1, 256) row for VPU fc3
            b3.reshape(1, 1).astype(jnp.float32))


def softq_reference_f32(x, a, params):
    w1, b1, w2, b2, w3, b3 = params
    xa = jnp.concatenate([x, a], axis=1)
    h1 = jax.nn.relu(xa @ w1 + b1)
    h2 = jax.nn.relu(h1 @ w2 + b2)
    return h2 @ w3 + b3


def softq_reference_bf16(x, a, params):
    # Same bf16-operand / f32-accumulation arithmetic as the kernel (fc3 in f32).
    w1, b1, w2, b2, w3, b3 = params
    xa = jnp.concatenate([x, a], axis=1).astype(jnp.bfloat16)
    h1 = jax.nn.relu(jnp.dot(xa, w1.astype(jnp.bfloat16),
                             preferred_element_type=jnp.float32) + b1)
    h2 = jax.nn.relu(jnp.dot(h1.astype(jnp.bfloat16), w2.astype(jnp.bfloat16),
                             preferred_element_type=jnp.float32) + b2)
    return jnp.sum(h2 * w3.reshape(1, -1), axis=-1, keepdims=True) + b3


if __name__ == "__main__":
    # MuJoCo-ish SAC shapes: obs_dim=17, act_dim=6.
    OBS, ACT = 17, 6
    key = jax.random.PRNGKey(0)
    kx, ka, kp = jax.random.split(key, 3)
    params = init_params(kp, OBS, ACT)
    kparams = prepare_params(params)   # bf16 weight cast happens once, outside the step path

    # 1) tiny actor-step batch: single 8-row tile with boundary-padded reads
    B = 4
    x = jax.random.normal(kx, (B, OBS), jnp.float32)
    a = jax.random.normal(ka, (B, ACT), jnp.float32)
    q = jax.block_until_ready(softq_forward(x, a, kparams))
    assert q.shape == (B, 1)
    np.testing.assert_allclose(np.asarray(q), np.asarray(softq_reference_bf16(x, a, params)),
                               rtol=5e-3, atol=5e-3)
    np.testing.assert_allclose(np.asarray(q), np.asarray(softq_reference_f32(x, a, params)),
                               rtol=5e-2, atol=5e-2)

    # 2) training-style batch: two parallel grid steps + ragged boundary tile (100 -> 2x56)
    B2 = 100
    kx2, ka2 = jax.random.split(jax.random.PRNGKey(1))
    x2 = jax.random.normal(kx2, (B2, OBS), jnp.float32)
    a2 = jax.random.normal(ka2, (B2, ACT), jnp.float32)
    q2 = jax.block_until_ready(softq_forward(x2, a2, kparams))
    assert q2.shape == (B2, 1)
    np.testing.assert_allclose(np.asarray(q2), np.asarray(softq_reference_bf16(x2, a2, params)),
                               rtol=5e-3, atol=5e-3)

    # 3) explicit tile cap exercising a >2-step grid (320 rows -> 5 tiles of 64)
    B3 = 320
    kx3, ka3 = jax.random.split(jax.random.PRNGKey(2))
    x3 = jax.random.normal(kx3, (B3, OBS), jnp.float32)
    a3 = jax.random.normal(ka3, (B3, ACT), jnp.float32)
    q3 = jax.block_until_ready(softq_forward(x3, a3, kparams, tb=64))
    assert q3.shape == (B3, 1)
    np.testing.assert_allclose(np.asarray(q3), np.asarray(softq_reference_bf16(x3, a3, params)),
                               rtol=5e-3, atol=5e-3)

    # TODO(synk): fuse both SAC critics (qf1 + qf2) into one pallas_call at the training-loop
    # level (stack W1/W2 along N to 512 and W3 rows to (2, 256)) to share the xa DMA and
    # per-call overhead, and to give v7x a natural 2-wide parallel axis even at B~4.
    print("KERNEL_OK")
</pallas_src>

<mosaic_0001>
module attributes {stable_mosaic.version = 11 : i64} {
  func.func @softq_kernel(%arg0: i32, %arg1: memref<8x23xbf16, #tpu.memory_space<vmem>>, %arg2: memref<23x256xbf16, #tpu.memory_space<vmem>>, %arg3: memref<1x256xf32, #tpu.memory_space<vmem>>, %arg4: memref<256x256xbf16, #tpu.memory_space<vmem>>, %arg5: memref<1x256xf32, #tpu.memory_space<vmem>>, %arg6: memref<1x256xf32, #tpu.memory_space<vmem>>, %arg7: memref<1x1xf32, #tpu.memory_space<smem>>, %arg8: memref<1x1x8xf32, #tpu.memory_space<vmem>>) attributes {dimension_semantics = [#tpu.dimension_semantics<parallel>], iteration_bounds = array<i64: 1>, scalar_prefetch = 0 : i64, scratch_operands = 0 : i64, tpu.core_type = #tpu.core_type<tc>, window_params = [{transform_indices = @transform_0, window_bounds = array<i64: 8, 23>}, {pipeline_mode = #tpu.pipeline_mode<synchronous>, transform_indices = @transform_1, window_bounds = array<i64: 23, 256>}, {pipeline_mode = #tpu.pipeline_mode<synchronous>, transform_indices = @transform_2, window_bounds = array<i64: 1, 256>}, {pipeline_mode = #tpu.pipeline_mode<synchronous>, transform_indices = @transform_3, window_bounds = array<i64: 256, 256>}, {pipeline_mode = #tpu.pipeline_mode<synchronous>, transform_indices = @transform_4, window_bounds = array<i64: 1, 256>}, {pipeline_mode = #tpu.pipeline_mode<synchronous>, transform_indices = @transform_5, window_bounds = array<i64: 1, 256>}, {transform_indices = @transform_6, window_bounds = array<i64: 1, 1>}, {transform_indices = @transform_7, window_bounds = array<i64: 1, 1, 8>}]} {
    %c0 = arith.constant 0 : index
    %c0_0 = arith.constant 0 : index
    %0 = vector.load %arg1[%c0, %c0_0] : memref<8x23xbf16, #tpu.memory_space<vmem>>, vector<8x23xbf16>
    %c0_1 = arith.constant 0 : index
    %c0_2 = arith.constant 0 : index
    %1 = vector.load %arg2[%c0_1, %c0_2] : memref<23x256xbf16, #tpu.memory_space<vmem>>, vector<23x256xbf16>
    %cst = arith.constant dense<0.000000e+00> : vector<8x256xf32>
    %2 = tpu.matmul %0, %1, %cst {dimension_numbers = #tpu.dot_dimension_numbers<[1], [0], [0], [1], [0, 0, 1, 1], [], []>} : vector<8x23xbf16>, vector<23x256xbf16>, vector<8x256xf32> -> vector<8x256xf32>
    %c0_3 = arith.constant 0 : index
    %c0_4 = arith.constant 0 : index
    %3 = vector.load %arg3[%c0_3, %c0_4] : memref<1x256xf32, #tpu.memory_space<vmem>>, vector<1x256xf32>
    %4 = vector.broadcast %3 : vector<1x256xf32> to vector<8x256xf32>
    %5 = arith.addf %2, %4 : vector<8x256xf32>
    %cst_5 = arith.constant 0.000000e+00 : f32
    %6 = vector.broadcast %cst_5 : f32 to vector<8x256xf32>
    %7 = arith.maximumf %5, %6 : vector<8x256xf32>
    %8 = arith.truncf %7 : vector<8x256xf32> to vector<8x256xbf16>
    %c0_6 = arith.constant 0 : index
    %c0_7 = arith.constant 0 : index
    %9 = vector.load %arg4[%c0_6, %c0_7] : memref<256x256xbf16, #tpu.memory_space<vmem>>, vector<256x256xbf16>
    %cst_8 = arith.constant dense<0.000000e+00> : vector<8x256xf32>
    %10 = tpu.matmul %8, %9, %cst_8 {dimension_numbers = #tpu.dot_dimension_numbers<[1], [0], [0], [1], [0, 0, 1, 1], [], []>} : vector<8x256xbf16>, vector<256x256xbf16>, vector<8x256xf32> -> vector<8x256xf32>
    %c0_9 = arith.constant 0 : index
    %c0_10 = arith.constant 0 : index
    %11 = vector.load %arg5[%c0_9, %c0_10] : memref<1x256xf32, #tpu.memory_space<vmem>>, vector<1x256xf32>
    %12 = vector.broadcast %11 : vector<1x256xf32> to vector<8x256xf32>
    %13 = arith.addf %10, %12 : vector<8x256xf32>
    %cst_11 = arith.constant 0.000000e+00 : f32
    %14 = vector.broadcast %cst_11 : f32 to vector<8x256xf32>
    %15 = arith.maximumf %13, %14 : vector<8x256xf32>
    %c0_12 = arith.constant 0 : index
    %c0_13 = arith.constant 0 : index
    %16 = vector.load %arg6[%c0_12, %c0_13] : memref<1x256xf32, #tpu.memory_space<vmem>>, vector<1x256xf32>
    %17 = vector.broadcast %16 : vector<1x256xf32> to vector<8x256xf32>
    %18 = arith.mulf %15, %17 : vector<8x256xf32>
    %cst_14 = arith.constant dense<0.000000e+00> : vector<8xf32>
    %19 = vector.multi_reduction <add>, %18, %cst_14 [1] : vector<8x256xf32> to vector<8xf32>
    %c0_15 = arith.constant 0 : index
    %c0_16 = arith.constant 0 : index
    %20 = memref.load %arg7[%c0_15, %c0_16] : memref<1x1xf32, #tpu.memory_space<smem>>
    %21 = vector.broadcast %20 : f32 to vector<8xf32>
    %22 = arith.addf %19, %21 : vector<8xf32>
    %23 = vector.shape_cast %22 : vector<8xf32> to vector<1x1x8xf32>
    %c0_17 = arith.constant 0 : index
    %c0_18 = arith.constant 0 : index
    %c0_19 = arith.constant 0 : index
    %24 = vector.load %arg8[%c0_17, %c0_18, %c0_19] : memref<1x1x8xf32, #tpu.memory_space<vmem>>, vector<1x1x8xf32>
    tpu.vector_store %arg8[%c0_17, %c0_18, %c0_19], %23 {strides = array<i32>} : memref<1x1x8xf32, #tpu.memory_space<vmem>>, vector<1x1x8xf32>,
    return
  }
  func.func @transform_0(%arg0: i32) -> (i32, i32) {
    %c0_i32 = arith.constant 0 : i32
    %c0_i32_0 = arith.constant 0 : i32
    return %arg0, %c0_i32 : i32, i32
  }
  func.func @transform_1(%arg0: i32) -> (i32, i32) {
    %c0_i32 = arith.constant 0 : i32
    %c0_i32_0 = arith.constant 0 : i32
    %c0_i32_1 = arith.constant 0 : i32
    return %c0_i32, %c0_i32_0 : i32, i32
  }
  func.func @transform_2(%arg0: i32) -> (i32, i32) {
    %c0_i32 = arith.constant 0 : i32
    %c0_i32_0 = arith.constant 0 : i32
    %c0_i32_1 = arith.constant 0 : i32
    return %c0_i32, %c0_i32_0 : i32, i32
  }
  func.func @transform_3(%arg0: i32) -> (i32, i32) {
    %c0_i32 = arith.constant 0 : i32
    %c0_i32_0 = arith.constant 0 : i32
    %c0_i32_1 = arith.constant 0 : i32
    return %c0_i32, %c0_i32_0 : i32, i32
  }
  func.func @transform_4(%arg0: i32) -> (i32, i32) {
    %c0_i32 = arith.constant 0 : i32
    %c0_i32_0 = arith.constant 0 : i32
    %c0_i32_1 = arith.constant 0 : i32
    return %c0_i32, %c0_i32_0 : i32, i32
  }
  func.func @transform_5(%arg0: i32) -> (i32, i32) {
    %c0_i32 = arith.constant 0 : i32
    %c0_i32_0 = arith.constant 0 : i32
    %c0_i32_1 = arith.constant 0 : i32
    return %c0_i32, %c0_i32_0 : i32, i32
  }
  func.func @transform_6(%arg0: i32) -> (i32, i32) {
    %c0_i32 = arith.constant 0 : i32
    %c0_i32_0 = arith.constant 0 : i32
    %c0_i32_1 = arith.constant 0 : i32
    return %c0_i32, %c0_i32_0 : i32, i32
  }
  func.func @transform_7(%arg0: i32) -> (i32, i32, i32) {
    %c0_i32 = arith.constant 0 : i32
    %c0_i32_0 = arith.constant 0 : i32
    %c0_i32_1 = arith.constant 0 : i32
    return %arg0, %c0_i32, %c0_i32_0 : i32, i32, i32
  }
}

</mosaic_0001>

<bundles_post_ra>
// kernel: softq_forward.1
= control target key start
LH: loop header
LB: loop body
LE: loop exit
PB: predicated region body
PF: predicated region fallthrough
CT: control target
= control target key end

     0   :  { %13 = vsyncpa [#allocation4], 0  ;;  %s737_s0 = inlined_call_operand.vmem [shape: bf16[4,23], index: 0, kind: input, shape index: {}]   ;;  %s738_s1 = inlined_call_operand.vmem [shape: bf16[23,256], index: 1, kind: input, shape index: {}]   ;;  %s739_s2 = inlined_call_operand.hbm [shape: f32[1,256], index: 2, kind: input, shape index: {}]   ;;  %s740_s3 = inlined_call_operand.hbm [shape: bf16[256,256], index: 3, kind: input, shape index: {}]   ;;  %s741_s4 = inlined_call_operand.hbm [shape: f32[1,256], index: 4, kind: input, shape index: {}]   ;;  %s742_s5 = inlined_call_operand.hbm [shape: f32[1,256], index: 5, kind: input, shape index: {}]   ;;  %s743_s6 = inlined_call_operand.<no memory space> [shape: f32[1,1], index: 6, kind: input, shape index: {}]   ;;  %s744_s7 = inlined_call_operand.vmem [shape: f32[1,1,8], index: 7, kind: output, shape index: {}]  }
   0x1   :  { %14 = vsyncpa [#allocation6], 0 }
   0x2   :  { %15 = vsyncpa [#allocation9], 0  ;;  %s647_s24 = smov [#allocation5]  }
   0x3   :  { %s35_s25 = sshll.u32 %s647_s24, 4  ;;  %s36_s25 = int_to_ptr.vmem [resolvable:$true] %s35_s25 }
   0x4   :  { %s569_s26 = scalar_lea.vmem %s36_s25, 4096  ;;  %p574_p1 = scmp.lt.s32.totalorder %s36_s25, %s36_s25 }
   0x5   :  { %p570_p0 = scmp.ne.s32.totalorder %s36_s25, %s569_s26  ;;  %p575_p2 = scmp.lt.s32.totalorder %s569_s26, %s569_s26 }
   0x7   :  { %p576_p3 = por %p575_p2, %p574_p1 }
   0x9   :  { %p577_p4 = pnand %p576_p3, %p570_p0 }
   0xb   :  { %580 = shalt.err (!%p577_p4)
}
   0xc   :  { %s648_s27 = smov 128   ;;  %s649_s28 = smov 8  }
   0xd   :  { %41 = dma.hbm_to_vmem [thread:$0]  %s740_s3, 4096, %s36_s25, [#allocation6], %s648_s27, %s648_s27, %s649_s28  }
   0xe   :  { %s650_s8 = smov [#allocation3]   ;;  %s651_s10 = smov [#allocation7]  }
   0xf   :  { %s26_s9 = sshll.u32 %s650_s8, 4  ;;  %s48_s11 = sshll.u32 %s651_s10, 4  ;;  %s27_s9 = int_to_ptr.vmem [resolvable:$true] %s26_s9  ;;  %s49_s11 = int_to_ptr.vmem [resolvable:$true] %s48_s11 }
  0x10   :  { %s589_s12 = scalar_lea.vmem %s27_s9, 32  ;;  %p594_p6 = scmp.lt.s32.totalorder %s27_s9, %s27_s9 }
  0x11   :  { %p590_p5 = scmp.ne.s32.totalorder %s27_s9, %s589_s12  ;;  %p595_p7 = scmp.lt.s32.totalorder %s589_s12, %s589_s12 }
  0x13   :  { %p596_p8 = por %p595_p7, %p594_p6 }
  0x15   :  { %p597_p9 = pnand %p596_p8, %p590_p5 }
  0x17   :  { %600 = shalt.err (!%p597_p9)
}
  0x18   :  { %29 = dma.hbm_to_vmem [thread:$0]  %s739_s2, 32, %s27_s9, [#allocation4]  }
  0x19   :  { %s609_s15 = scalar_lea.vmem %s49_s11, 32  ;;  %p614_p11 = scmp.lt.s32.totalorder %s49_s11, %s49_s11 }
  0x1a   :  { %p610_p10 = scmp.ne.s32.totalorder %s49_s11, %s609_s15  ;;  %p615_p12 = scmp.lt.s32.totalorder %s609_s15, %s609_s15 }
  0x1c   :  { %p616_p13 = por %p615_p12, %p614_p11 }
  0x1e   :  { %p617_p0 = pnand %p616_p13, %p610_p10 }
  0x20   :  { %620 = shalt.err (!%p617_p0)
}
  0x21   :  { %51 = dma.hbm_to_vmem [thread:$0]  %s741_s4, 32, %s49_s11, [#allocation6]  }
  0x22   :  { %s652_s17 = smov [#allocation8]  }
  0x23   :  { %s58_s18 = sshll.u32 %s652_s17, 4  ;;  %s59_s18 = int_to_ptr.vmem [resolvable:$true] %s58_s18 }
  0x24   :  { %s629_s19 = scalar_lea.vmem %s59_s18, 32  ;;  %p634_p2 = scmp.lt.s32.totalorder %s59_s18, %s59_s18 }
  0x25   :  { %p630_p1 = scmp.ne.s32.totalorder %s59_s18, %s629_s19  ;;  %p635_p3 = scmp.lt.s32.totalorder %s629_s19, %s629_s19 }
  0x27   :  { %p636_p4 = por %p635_p3, %p634_p2 }
  0x29   :  { %p637_p5 = pnand %p636_p4, %p630_p1 }
  0x2b   :  { %640 = shalt.err (!%p637_p5)
}
  0x2c   :  { %61 = dma.hbm_to_vmem [thread:$0]  %s742_s5, 32, %s59_s18, [#allocation9]  }
  0x2d   :  { %641 = dma.done.wait [#allocation4], 32  }
  0x2e   :  { %642 = vsyncadd [#allocation4], 4294967264 }
  0x2f   :  { %643 = dma.done.wait [#allocation6], 4128  }
  0x30   :  { %644 = vsyncadd [#allocation6], 4294963168 }
  0x31   :  { %645 = dma.done.wait [#allocation9], 32  }
  0x32   :  { %646 = vsyncadd [#allocation9], 4294967264  ;;  %vm123_vm0 = vcmask 1042432   ;;  %v653_v0 = vmov 0   ;;  %vm124_vm1 = vcmask 1043456   ;;  %v654_v1 = vmov 65535  }
  0x33   :  { %165 = vmatprep.mubr.bf16.mxu0 %v653_v0  ;;  %v125_v2 = vsel %vm123_vm0, 4294967295, %v654_v1  ;;  %v84_v3 = vlaneseq  ;;  %v655_v4 = vmov 1983009808   ;;  %v81_v6 = vld [vmem:[%s738_s1 + $0x10] sm:$0xff]  ;;  %v510_v10 = vld [vmem:[%s738_s1 + $0x4] ss:$8 sps:$4 sm:$0xff]  }
  0x34   :  { %v98_v5 = vunpack.c.l.s4 %v655_v4  ;;  %v126_v7 = vsel %vm124_vm1, %v125_v2, 0  ;;  %v465_v8 = vcombine.high %v81_v6, %v81_v6  ;;  %v464_v9 = vcombine.low %v81_v6, %v81_v6  ;;  %v77_v11 = vld [vmem:[%s737_s0] sm:$0x3]  ;;  %v78_v14 = vld [vmem:[%s737_s0 + $0x2] sm:$0x3] }
  0x35   :  { %v718_v12 = vshrl.u32 %v84_v3, 7  ;;  %v513_v17 = vld [vmem:[#allocation5 + $0x74] ss:$8 sps:$4 sm:$0xff]   ;;  %v515_v18 = vld [vmem:[#allocation5 + $0x70] ss:$8 sps:$4 sm:$0xff]   ;;  %v96_v21 = vcombine.low %v77_v11, %v78_v14  ;;  %vm119_vm2 = vcmask 187392  }
  0x36   :  { %v99_v13 = vunpack.c.0.s8 %v98_v5  ;;  %v131_v15 = vand.u32 %v465_v8, %v126_v7  ;;  %v128_v16 = vand.u32 %v464_v9, %v126_v7  ;;  %v516_v19 = vld [vmem:[#allocation5 + $0x64] ss:$8 sps:$4 sm:$0xff]   ;;  %382 = vmatprep.subr.bf16.mxu1 %v513_v17  ;;  %v518_v23 = vld [vmem:[#allocation5 + $0x60] ss:$8 sps:$4 sm:$0xff]   ;;  %v519_v24 = vld [vmem:[#allocation5 + $0x54] ss:$8 sps:$4 sm:$0xff]  }
  0x37   :  { %v512_v20 = vld [vmem:[%s738_s1] ss:$8 sps:$4 sm:$0xff]   ;;  %383 = vmatpush1.bf16.msra.mxu1 %v515_v18  ;;  %v521_v26 = vld [vmem:[#allocation5 + $0x50] ss:$8 sps:$4 sm:$0xff]   ;;  %v86_v53 = vsub.s32 0, %v718_v12  ;;  %v90_v55 = vsub.s32 1, %v718_v12 }
  0x38   :  { %145 = vmatprep.subr.bf16.mxu0 %v131_v15  ;;  %v102_v22 = vsub.s32 %v99_v13, %v718_v12  ;;  %384 = vmatprep.subr.bf16.mxu1 %v516_v19  ;;  %v522_v27 = vld [vmem:[#allocation5 + $0x44] ss:$8 sps:$4 sm:$0xff]   ;;  %v524_v28 = vld [vmem:[#allocation5 + $0x40] ss:$8 sps:$4 sm:$0xff]   ;;  %v525_v29 = vld [vmem:[#allocation5 + $0x34] ss:$8 sps:$4 sm:$0xff]  }
  0x39   :  { %146 = vmatpush1.bf16.msra.mxu0 %v128_v16  ;;  %v527_v30 = vld [vmem:[#allocation5 + $0x30] ss:$8 sps:$4 sm:$0xff]   ;;  %v528_v31 = vld [vmem:[#allocation5 + $0x24] ss:$8 sps:$4 sm:$0xff]   ;;  %v530_v32 = vld [vmem:[#allocation5 + $0x20] ss:$8 sps:$4 sm:$0xff]  }
  0x3a   :  { %147 = vmatprep.subr.bf16.mxu0 %v510_v10  ;;  %v103_v25 = vrot.slane %v96_v21, %v102_v22  ;;  %v531_v33 = vld [vmem:[#allocation5 + $0x14] ss:$8 sps:$4 sm:$0xff]   ;;  %v533_v34 = vld [vmem:[#allocation5 + $0x10] ss:$8 sps:$4 sm:$0xff]   ;;  %v534_v35 = vld [vmem:[#allocation5 + $0x4] ss:$8 sps:$4 sm:$0xff]  }
  0x3b   :  { %385 = vmatpush1.bf16.msra.mxu1 %v518_v23  ;;  %v536_v36 = vld [vmem:[#allocation5] ss:$8 sps:$4 sm:$0xff]   ;;  %v537_v37 = vld [vmem:[#allocation5 + $0xf4] ss:$8 sps:$4 sm:$0xff]   ;;  %v539_v38 = vld [vmem:[#allocation5 + $0xf0] ss:$8 sps:$4 sm:$0xff]  }
  0x3c   :  { %386 = vmatprep.subr.bf16.mxu1 %v519_v24  ;;  %v540_v39 = vld [vmem:[#allocation5 + $0xe4] ss:$8 sps:$4 sm:$0xff]   ;;  %v542_v40 = vld [vmem:[#allocation5 + $0xe0] ss:$8 sps:$4 sm:$0xff]   ;;  %v543_v41 = vld [vmem:[#allocation5 + $0xd4] ss:$8 sps:$4 sm:$0xff]   ;;  %v443_v24 = vstv %s743_s6 }
  0x3d   :  { %148 = vmatpush1.bf16.msra.mxu0 %v512_v20  ;;  %v545_v42 = vld [vmem:[#allocation5 + $0xd0] ss:$8 sps:$4 sm:$0xff]   ;;  %v546_v43 = vld [vmem:[#allocation5 + $0xc4] ss:$8 sps:$4 sm:$0xff]   ;;  %v548_v44 = vld [vmem:[#allocation5 + $0xc0] ss:$8 sps:$4 sm:$0xff]  }
  0x3e   :  { %v549_v45 = vld [vmem:[#allocation5 + $0xb4] ss:$8 sps:$4 sm:$0xff]   ;;  %v551_v46 = vld [vmem:[#allocation5 + $0xb0] ss:$8 sps:$4 sm:$0xff]   ;;  %v552_v47 = vld [vmem:[#allocation5 + $0xa4] ss:$8 sps:$4 sm:$0xff]  }
  0x3f   :  { %387 = vmatpush1.bf16.msra.mxu1 %v521_v26  ;;  %v554_v48 = vld [vmem:[#allocation5 + $0xa0] ss:$8 sps:$4 sm:$0xff]   ;;  %v555_v49 = vld [vmem:[#allocation5 + $0x94] ss:$8 sps:$4 sm:$0xff]   ;;  %v557_v50 = vld [vmem:[#allocation5 + $0x90] ss:$8 sps:$4 sm:$0xff]  }
  0x40   :  { %466 = vmatmul.mubr.msk.bf16.vlgmr.msra.gmra.mxu0 %vm119_vm2, %v103_v25  ;;  %388 = vmatprep.subr.bf16.mxu1 %v522_v27  ;;  %v558_v51 = vld [vmem:[#allocation5 + $0x84] ss:$8 sps:$4 sm:$0xff]   ;;  %v560_v52 = vld [vmem:[#allocation5 + $0x80] ss:$8 sps:$4 sm:$0xff]   ;;  %v82_v54 = vld [vmem:[#allocation3] sm:$0x3] }
  0x41   :  { %v87_v56 = vrot.slane %v82_v54, %v86_v53  ;;  %v91_v57 = vrot.slane %v82_v54, %v90_v55  ;;  %v210_v5 = vld [vmem:[#allocation7] sm:$0x3]  ;;  %v425_v9 = vld [vmem:[#allocation8] sm:$0x3]  ;;  %v447_v23 = vand.u32 127, %v84_v3  ;;  %vm453_vm3 = vcmask 57344  }
  0x42   :  { %v215_v6 = vrot.slane %v210_v5, %v86_v53  ;;  %v219_v7 = vrot.slane %v210_v5, %v90_v55  ;;  %v430_v15 = vrot.slane %v425_v9, %v86_v53  ;;  %v434_v16 = vrot.slane %v425_v9, %v90_v55 }
  0x43   :  { %389 = vmatpush1.bf16.msra.mxu1 %v524_v28  ;;  %v450_v25 = vsub.s32 %v447_v23, %v718_v12 }
  0x44   :  { %390 = vmatprep.subr.bf16.mxu1 %v525_v29 }
  0x47   :  { %391 = vmatpush1.bf16.msra.mxu1 %v527_v30 }
  0x48   :  { %392 = vmatprep.subr.bf16.mxu1 %v528_v31 }
  0x4b   :  { %393 = vmatpush1.bf16.msra.mxu1 %v530_v32 }
  0x4c   :  { %394 = vmatprep.subr.bf16.mxu1 %v531_v33 }
  0x4f   :  { %395 = vmatpush1.bf16.msra.mxu1 %v533_v34 }
  0x50   :  { %396 = vmatprep.subr.bf16.mxu1 %v534_v35 }
  0x53   :  { %397 = vmatpush1.bf16.msra.mxu1 %v536_v36 }
  0x54   :  { %398 = vmatprep.subr.bf16.mxu1 %v537_v37 }
  0x57   :  { %399 = vmatpush2.bf16.msra.mxu1 %v539_v38 }
  0x58   :  { %400 = vmatprep.subr.bf16.mxu1 %v540_v39 }
  0x5b   :  { %401 = vmatpush2.bf16.msra.mxu1 %v542_v40 }
  0x5c   :  { %402 = vmatprep.subr.bf16.mxu1 %v543_v41 }
  0x5f   :  { %403 = vmatpush2.bf16.msra.mxu1 %v545_v42 }
  0x60   :  { %404 = vmatprep.subr.bf16.mxu1 %v546_v43 }
  0x63   :  { %405 = vmatpush2.bf16.msra.mxu1 %v548_v44 }
  0x64   :  { %406 = vmatprep.subr.bf16.mxu1 %v549_v45 }
  0x67   :  { %407 = vmatpush2.bf16.msra.mxu1 %v551_v46 }
  0x68   :  { %408 = vmatprep.subr.bf16.mxu1 %v552_v47 }
  0x6b   :  { %409 = vmatpush2.bf16.msra.mxu1 %v554_v48 }
  0x6c   :  { %410 = vmatprep.subr.bf16.mxu1 %v555_v49 }
  0x6f   :  { %411 = vmatpush2.bf16.msra.mxu1 %v557_v50 }
  0x70   :  { %412 = vmatprep.subr.bf16.mxu1 %v558_v51 }
  0x73   :  { %413 = vmatpush2.bf16.msra.mxu1 %v560_v52 }
 0x100   :  { %v167_v58 = vpop.f32.mrf.mxu0 }
 0x101   :  { %v168_v59 = vadd.f32 %v167_v58, %v87_v56 }
 0x102   :  { %v169_v60 = vpop.f32.mrf.mxu0 }
 0x103   :  { %v170_v61 = vadd.f32 %v169_v60, %v91_v57  ;;  %v174_v62 = vmax.f32 %v168_v59, 0.0 }
 0x104   :  { %v171_v63 = vpop.f32.mrf.mxu0 }
 0x105   :  { %v175_v0 = vmax.f32 %v170_v61, 0.0  ;;  %v176_v4 = vpack.c.bf16 %v174_v62, %v174_v62 }
 0x106   :  { %v172_v1 = vpop.f32.mrf.mxu0 }
 0x107   :  { %v177_v2 = vpack.c.bf16 %v175_v0, %v175_v0 }
 0x109   :  { %414 = vmatprep.mubr.bf16.mxu1 %v177_v2 }
 0x10a   :  { %415 = vmatmul.mubr.bf16.vlgmr.msra.gmra.mxu1 %v176_v4 }
 0x1ca   :  { %v416_v8 = vpop.f32.mrf.mxu1 }
 0x1cb   :  { %v417_v10 = vadd.f32 %v416_v8, %v215_v6 }
 0x1cc   :  { %v418_v11 = vpop.f32.mrf.mxu1 }
 0x1cd   :  { %v423_v13 = vmax.f32 %v417_v10, 0.0  ;;  %v419_v14 = vadd.f32 %v418_v11, %v219_v7 }
 0x1ce   :  { %v420_v17 = vpop.f32.mrf.mxu1 }
 0x1cf   :  { %v424_v18 = vmax.f32 %v419_v14, 0.0  ;;  %v437_v20 = vmul.f32 %v430_v15, %v423_v13 }
 0x1d0   :  { %v421_v19 = vpop.f32.mrf.mxu1 }
 0x1d1   :  { %v438_v21 = vmul.f32 %v434_v16, %v424_v18 }
 0x1d3   :  { %v439_v22 = vadd.f32 %v438_v21, %v437_v20 }
 0x1d5   :  { %440 = vadd.xlane.f32.xlu0 %v439_v22 }
 0x25e   :  { %v441_v26 = vpop.xlane.xlu0 %440 }
 0x25f   :  { %v444_v27 = vadd.f32 %v443_v24, %v441_v26 }
 0x261   :  { %v451_v28 = vrot.slane %v444_v27, %v450_v25 }
 0x263   :  { %454 = vst.msk [vmem:[%s744_s7] sm:$0x1] %vm453_vm3, %v451_v28 }
 0x264   :  { %459 = vsyncpa [#allocation4], 1 }
 0x265   :  { %460 = vsyncpa [#allocation6], 1 }
 0x266   :  { %461 = vsyncpa [#allocation9], 1 }

</bundles_post_ra>
